<compile_context>
chip_gen: v6e
topology: v6e:2x2x1
jax: 0.10.0
libtpu: 0.0.40
codegen_flags: <defaults>
</compile_context>

<pallas_src>
import functools

import jax
import jax.numpy as jnp
from jax import lax
from jax.experimental import pallas as pl
from jax.experimental.pallas import tpu as pltpu


def _blaze_kernel(x_ref, dww_ref, dwb_ref, pww_ref, pwb_ref, out_ref, *,
                  K, s, pad_t, pad_l, TH, Wo, Cin, Cout, use_mxu):
    """One (batch, output-row-block) tile of BlazeBlock.

    x_ref   : (s*s, 1, Hph, Wph, Cin)  s*s-phase view of the zero-padded image
    dww_ref : (K*K, 1, Cin)            depthwise weights
    dwb_ref : (1, Cin)                 depthwise bias
    pww_ref : (Cin, Cout)              pointwise weights
    pwb_ref : (1, Cout)                pointwise bias
    out_ref : (1, TH, Wo, Cout)        output rows [r*TH, (r+1)*TH)
    """
    r = pl.program_id(1)
    row0 = r * TH

    def tap(kh, kw):
        # padded-image element (kh + s*i, kw + s*j) for the TH x Wo output
        # window of this row block == contiguous slice of one phase plane.
        p = (kh % s) * s + (kw % s)
        ro, co = kh // s, kw // s
        return x_ref[p, 0, pl.ds(row0 + ro, TH), pl.ds(co, Wo), :]

    # ---- depthwise KxK conv (VPU): init with tap0*w0 + bias, then accumulate
    acc = tap(0, 0) * dww_ref[0] + dwb_ref[...]
    for t in range(1, K * K):
        kh, kw = divmod(t, K)
        acc = acc + tap(kh, kw) * dww_ref[t]

    # ---- pointwise 1x1 conv
    if use_mxu:
        y = jnp.dot(acc.reshape(TH * Wo, Cin), pww_ref[...],
                    preferred_element_type=jnp.float32)
        y = (y + pwb_ref[...]).reshape(TH, Wo, Cout)
    else:
        # tiny channel counts: Cin broadcast-MACs beat a <1%-utilised MXU
        y = acc[:, :, 0:1] * pww_ref[0:1, :] + pwb_ref[...]
        for ci in range(1, Cin):
            y = y + acc[:, :, ci:ci + 1] * pww_ref[ci:ci + 1, :]

    # ---- shortcut: 2x2 max-pool (stride s) when s > 1, identity otherwise.
    # (pad_t, pad_l) shifts back to un-padded image coordinates.
    def sc_tap(a, b):
        p = ((pad_t + a) % s) * s + ((pad_l + b) % s)
        ro, co = (pad_t + a) // s, (pad_l + b) // s
        return x_ref[p, 0, pl.ds(row0 + ro, TH), pl.ds(co, Wo), :]

    h = sc_tap(0, 0)
    if s > 1:
        for a, b in ((0, 1), (1, 0), (1, 1)):
            h = jnp.maximum(h, sc_tap(a, b))

    # ---- residual add with zero channel-pad, single full-width store
    if Cout > Cin:
        h = jnp.concatenate(
            [h, jnp.zeros((TH, Wo, Cout - Cin), jnp.float32)], axis=-1)
    out_ref[0] = (y + h).astype(out_ref.dtype)


def _padded_bytes(shape, dtype_bytes=4):
    """Rough VMEM footprint with (8,128) tiling on the last two dims."""
    *lead, sub, lane = shape
    n = dtype_bytes * (-(-sub // 8) * 8) * (-(-lane // 128) * 128)
    for d in lead:
        n *= d
    return n


def blaze_block(x_nchw, dw_w, dw_b, pw_w, pw_b, *, kernel_size=3, stride=1,
                row_block=None):
    """BlazeBlock forward.  x_nchw: (B, Cin, H, W) float32.
    PyTorch weight layouts: dw_w (Cin,1,K,K), dw_b (Cin,), pw_w (Cout,Cin,1,1),
    pw_b (Cout,).  Returns NCHW (B, Cout, ceil(H/s), ceil(W/s))."""
    B, Cin, H, W = map(int, x_nchw.shape)
    Cout = int(pw_w.shape[0])
    K, s = int(kernel_size), int(stride)
    assert Cout >= Cin, "BlazeBlock shortcut requires out_channels >= in_channels"
    if s > 1:
        assert s == 2 and H % 2 == 0 and W % 2 == 0, \
            "stride>1 shortcut (2x2 maxpool) requires stride=2 and even H, W"

    # TODO(synk): keep the whole model NHWC to drop these boundary transposes.
    x = jnp.transpose(x_nchw, (0, 2, 3, 1)).astype(jnp.float32)        # NHWC

    # TF 'same' padding, exactly as ConvTF.compute_valid_shape
    Ho, Wo = -(-H // s), -(-W // s)
    pad_h = (Ho - 1) * s + 1 + (K - 1) - H
    pad_w = (Wo - 1) * s + 1 + (K - 1) - W
    pad_t, pad_b = pad_h // 2, pad_h - pad_h // 2
    pad_l, pad_r = pad_w // 2, pad_w - pad_w // 2
    xpad = jnp.pad(x, ((0, 0), (pad_t, pad_b), (pad_l, pad_r), (0, 0)))
    Hp, Wp = H + pad_h, W + pad_w

    # Single s*s-phase (space-to-depth) view of the padded input.  The kernel
    # extracts all depthwise + pool taps from it with contiguous slices.
    Hp2, Wp2 = -(-Hp // s) * s, -(-Wp // s) * s
    xpad = jnp.pad(xpad, ((0, 0), (0, Hp2 - Hp), (0, Wp2 - Wp), (0, 0)))
    phases = jnp.stack([xpad[:, a::s, b::s, :]
                        for a in range(s) for b in range(s)], axis=0)
    PP, _, Hph, Wph, _ = (int(d) for d in phases.shape)

    # repack weights into kernel layouts
    dww = jnp.transpose(dw_w[:, 0, :, :], (1, 2, 0)).reshape(K * K, 1, Cin)
    dww = dww.astype(jnp.float32)
    dwb = dw_b.reshape(1, Cin).astype(jnp.float32)
    pww = jnp.transpose(pw_w[:, :, 0, 0], (1, 0)).astype(jnp.float32)  # (Cin, Cout)
    pwb = pw_b.reshape(1, Cout).astype(jnp.float32)

    # output row-block: largest divisor of Ho with a ~1 MiB output tile
    if row_block is None:
        target = 1 << 20
        row_block = max([d for d in range(1, Ho + 1)
                         if Ho % d == 0 and d * Wo * Cout * 4 <= target] or [1])
    TH = int(row_block)
    assert Ho % TH == 0, "row_block must divide the output height"
    NR = Ho // TH

    use_mxu = Cin >= 32   # below this the MXU is <1% utilised; VPU path wins

    kernel = functools.partial(
        _blaze_kernel, K=K, s=s, pad_t=pad_t, pad_l=pad_l, TH=TH, Wo=Wo,
        Cin=Cin, Cout=Cout, use_mxu=use_mxu)

    # explicit VMEM budget (double-buffered per-image input + output tiles)
    in_bytes = _padded_bytes((PP, 1, Hph, Wph, Cin))
    out_bytes = _padded_bytes((1, TH, Wo, Cout))
    vmem_limit = int(min(48 << 20,
                         max(2 * in_bytes + 8 * out_bytes + (4 << 20), 16 << 20)))

    out_nhwc = pl.pallas_call(
        kernel,
        out_shape=jax.ShapeDtypeStruct((B, Ho, Wo, Cout), jnp.float32),
        grid=(B, NR),
        in_specs=[
            # full phase view of ONE image; index_map ignores the row axis so
            # the image is DMA'd once per batch and reused by all row blocks.
            pl.BlockSpec((PP, 1, Hph, Wph, Cin), lambda b, r: (0, b, 0, 0, 0)),
            pl.BlockSpec((K * K, 1, Cin), lambda b, r: (0, 0, 0)),
            pl.BlockSpec((1, Cin), lambda b, r: (0, 0)),
            pl.BlockSpec((Cin, Cout), lambda b, r: (0, 0)),
            pl.BlockSpec((1, Cout), lambda b, r: (0, 0)),
        ],
        out_specs=pl.BlockSpec((1, TH, Wo, Cout), lambda b, r: (b, r, 0, 0)),
        compiler_params=pltpu.CompilerParams(
            dimension_semantics=("parallel", "parallel"),
            vmem_limit_bytes=vmem_limit),
    )(phases, dww, dwb, pww, pwb)

    return jnp.transpose(out_nhwc, (0, 3, 1, 2))   # -> NCHW


def blaze_block_ref(x, dw_w, dw_b, pw_w, pw_b, *, kernel_size=3, stride=1):
    """Pure-JAX reference mirroring the PyTorch module (NCHW)."""
    B, Cin, H, W = x.shape
    Cout = pw_w.shape[0]
    K, s = kernel_size, stride
    Ho, Wo = -(-H // s), -(-W // s)
    pad_h = (Ho - 1) * s + 1 + (K - 1) - H
    pad_w = (Wo - 1) * s + 1 + (K - 1) - W
    xp = jnp.pad(x, ((0, 0), (0, 0),
                     (pad_h // 2, pad_h - pad_h // 2),
                     (pad_w // 2, pad_w - pad_w // 2)))
    dn = ('NCHW', 'OIHW', 'NCHW')
    y = lax.conv_general_dilated(xp, dw_w, (s, s), 'VALID',
                                 feature_group_count=Cin, dimension_numbers=dn)
    y = y + dw_b[None, :, None, None]
    y = lax.conv_general_dilated(y, pw_w, (1, 1), 'VALID', dimension_numbers=dn)
    y = y + pw_b[None, :, None, None]
    if s > 1:
        h = lax.reduce_window(x, -jnp.inf, lax.max, (1, 1, 2, 2), (1, 1, s, s), 'VALID')
    else:
        h = x
    if Cout > Cin:
        h = jnp.pad(h, ((0, 0), (0, Cout - Cin), (0, 0), (0, 0)))
    return y + h


if __name__ == "__main__":
    key = jax.random.PRNGKey(0)
    configs = [
        dict(B=2, Cin=8,  Cout=16, H=16, W=16, K=3, stride=2, row_block=4),  # pool + chan pad, VPU 1x1
        dict(B=2, Cin=8,  Cout=8,  H=16, W=16, K=3, stride=1, row_block=8),  # identity shortcut
        dict(B=1, Cin=32, Cout=64, H=16, W=16, K=3, stride=2, row_block=4),  # MXU 1x1 path
        dict(B=1, Cin=8,  Cout=8,  H=12, W=12, K=5, stride=2, row_block=3),  # K=5, asymmetric pad
    ]
    for cfg in configs:
        B, Cin, Cout, H, W, K, s, rb = (cfg[k] for k in
            ("B", "Cin", "Cout", "H", "W", "K", "stride", "row_block"))
        key, k1, k2, k3, k4, k5 = jax.random.split(key, 6)
        x = jax.random.normal(k1, (B, Cin, H, W), jnp.float32)
        dw_w = jax.random.normal(k2, (Cin, 1, K, K), jnp.float32) * 0.2
        dw_b = jax.random.normal(k3, (Cin,), jnp.float32) * 0.1
        pw_w = jax.random.normal(k4, (Cout, Cin, 1, 1), jnp.float32) * 0.2
        pw_b = jax.random.normal(k5, (Cout,), jnp.float32) * 0.1

        out = jax.block_until_ready(
            blaze_block(x, dw_w, dw_b, pw_w, pw_b,
                        kernel_size=K, stride=s, row_block=rb))
        ref = blaze_block_ref(x, dw_w, dw_b, pw_w, pw_b, kernel_size=K, stride=s)
        assert out.shape == ref.shape, (out.shape, ref.shape)
        err = float(jnp.max(jnp.abs(out - ref)))
        assert jnp.allclose(out, ref, atol=1e-2, rtol=1e-2), (cfg, err)
    print("KERNEL_OK")
</pallas_src>

<mosaic_0001>
module attributes {stable_mosaic.version = 11 : i64} {
  func.func @_blaze_kernel(%arg0: i32, %arg1: i32, %arg2: memref<4x1x9x9x8xf32, #tpu.memory_space<vmem>>, %arg3: memref<9x1x8xf32, #tpu.memory_space<vmem>>, %arg4: memref<1x8xf32, #tpu.memory_space<vmem>>, %arg5: memref<8x16xf32, #tpu.memory_space<vmem>>, %arg6: memref<1x16xf32, #tpu.memory_space<vmem>>, %arg7: memref<1x4x8x16xf32, #tpu.memory_space<vmem>>) attributes {dimension_semantics = [#tpu.dimension_semantics<parallel>, #tpu.dimension_semantics<parallel>], iteration_bounds = array<i64: 2, 2>, scalar_prefetch = 0 : i64, scratch_operands = 0 : i64, tpu.core_type = #tpu.core_type<tc>, window_params = [{transform_indices = @transform_0, window_bounds = array<i64: 4, 1, 9, 9, 8>}, {pipeline_mode = #tpu.pipeline_mode<synchronous>, transform_indices = @transform_1, window_bounds = array<i64: 9, 1, 8>}, {pipeline_mode = #tpu.pipeline_mode<synchronous>, transform_indices = @transform_2, window_bounds = array<i64: 1, 8>}, {pipeline_mode = #tpu.pipeline_mode<synchronous>, transform_indices = @transform_3, window_bounds = array<i64: 8, 16>}, {pipeline_mode = #tpu.pipeline_mode<synchronous>, transform_indices = @transform_4, window_bounds = array<i64: 1, 16>}, {transform_indices = @transform_5, window_bounds = array<i64: 1, 4, 8, 16>}]} {
    %c4_i32 = arith.constant 4 : i32
    %0 = arith.muli %arg1, %c4_i32 : i32
    %c0_i32 = arith.constant 0 : i32
    %1 = arith.addi %0, %c0_i32 : i32
    %c0 = arith.constant 0 : index
    %c0_0 = arith.constant 0 : index
    %2 = arith.index_cast %1 : i32 to index
    %c0_1 = arith.constant 0 : index
    %c0_2 = arith.constant 0 : index
    %3 = vector.load %arg2[%c0, %c0_0, %2, %c0_1, %c0_2] : memref<4x1x9x9x8xf32, #tpu.memory_space<vmem>>, vector<1x1x4x8x8xf32>
    %4 = vector.shape_cast %3 : vector<1x1x4x8x8xf32> to vector<4x8x8xf32>
    %c0_3 = arith.constant 0 : index
    %c0_4 = arith.constant 0 : index
    %c0_5 = arith.constant 0 : index
    %5 = vector.load %arg3[%c0_3, %c0_4, %c0_5] : memref<9x1x8xf32, #tpu.memory_space<vmem>>, vector<1x1x8xf32>
    %6 = vector.shape_cast %5 : vector<1x1x8xf32> to vector<1x8xf32>
    %7 = vector.shape_cast %6 : vector<1x8xf32> to vector<1x1x8xf32>
    %8 = vector.broadcast %7 : vector<1x1x8xf32> to vector<4x8x8xf32>
    %9 = arith.mulf %4, %8 : vector<4x8x8xf32>
    %c0_6 = arith.constant 0 : index
    %c0_7 = arith.constant 0 : index
    %10 = vector.load %arg4[%c0_6, %c0_7] : memref<1x8xf32, #tpu.memory_space<vmem>>, vector<1x8xf32>
    %11 = vector.shape_cast %10 : vector<1x8xf32> to vector<1x1x8xf32>
    %12 = vector.broadcast %11 : vector<1x1x8xf32> to vector<4x8x8xf32>
    %13 = arith.addf %9, %12 : vector<4x8x8xf32>
    %c0_i32_8 = arith.constant 0 : i32
    %14 = arith.addi %0, %c0_i32_8 : i32
    %c1 = arith.constant 1 : index
    %c0_9 = arith.constant 0 : index
    %15 = arith.index_cast %14 : i32 to index
    %c0_10 = arith.constant 0 : index
    %c0_11 = arith.constant 0 : index
    %16 = vector.load %arg2[%c1, %c0_9, %15, %c0_10, %c0_11] : memref<4x1x9x9x8xf32, #tpu.memory_space<vmem>>, vector<1x1x4x8x8xf32>
    %17 = vector.shape_cast %16 : vector<1x1x4x8x8xf32> to vector<4x8x8xf32>
    %c1_12 = arith.constant 1 : index
    %c0_13 = arith.constant 0 : index
    %c0_14 = arith.constant 0 : index
    %18 = vector.load %arg3[%c1_12, %c0_13, %c0_14] : memref<9x1x8xf32, #tpu.memory_space<vmem>>, vector<1x1x8xf32>
    %19 = vector.shape_cast %18 : vector<1x1x8xf32> to vector<1x8xf32>
    %20 = vector.shape_cast %19 : vector<1x8xf32> to vector<1x1x8xf32>
    %21 = vector.broadcast %20 : vector<1x1x8xf32> to vector<4x8x8xf32>
    %22 = arith.mulf %17, %21 : vector<4x8x8xf32>
    %23 = arith.addf %13, %22 : vector<4x8x8xf32>
    %c0_i32_15 = arith.constant 0 : i32
    %24 = arith.addi %0, %c0_i32_15 : i32
    %c0_16 = arith.constant 0 : index
    %c0_17 = arith.constant 0 : index
    %25 = arith.index_cast %24 : i32 to index
    %c1_18 = arith.constant 1 : index
    %c0_19 = arith.constant 0 : index
    %26 = vector.load %arg2[%c0_16, %c0_17, %25, %c1_18, %c0_19] : memref<4x1x9x9x8xf32, #tpu.memory_space<vmem>>, vector<1x1x4x8x8xf32>
    %27 = vector.shape_cast %26 : vector<1x1x4x8x8xf32> to vector<4x8x8xf32>
    %c2 = arith.constant 2 : index
    %c0_20 = arith.constant 0 : index
    %c0_21 = arith.constant 0 : index
    %28 = vector.load %arg3[%c2, %c0_20, %c0_21] : memref<9x1x8xf32, #tpu.memory_space<vmem>>, vector<1x1x8xf32>
    %29 = vector.shape_cast %28 : vector<1x1x8xf32> to vector<1x8xf32>
    %30 = vector.shape_cast %29 : vector<1x8xf32> to vector<1x1x8xf32>
    %31 = vector.broadcast %30 : vector<1x1x8xf32> to vector<4x8x8xf32>
    %32 = arith.mulf %27, %31 : vector<4x8x8xf32>
    %33 = arith.addf %23, %32 : vector<4x8x8xf32>
    %c0_i32_22 = arith.constant 0 : i32
    %34 = arith.addi %0, %c0_i32_22 : i32
    %c2_23 = arith.constant 2 : index
    %c0_24 = arith.constant 0 : index
    %35 = arith.index_cast %34 : i32 to index
    %c0_25 = arith.constant 0 : index
    %c0_26 = arith.constant 0 : index
    %36 = vector.load %arg2[%c2_23, %c0_24, %35, %c0_25, %c0_26] : memref<4x1x9x9x8xf32, #tpu.memory_space<vmem>>, vector<1x1x4x8x8xf32>
    %37 = vector.shape_cast %36 : vector<1x1x4x8x8xf32> to vector<4x8x8xf32>
    %c3 = arith.constant 3 : index
    %c0_27 = arith.constant 0 : index
    %c0_28 = arith.constant 0 : index
    %38 = vector.load %arg3[%c3, %c0_27, %c0_28] : memref<9x1x8xf32, #tpu.memory_space<vmem>>, vector<1x1x8xf32>
    %39 = vector.shape_cast %38 : vector<1x1x8xf32> to vector<1x8xf32>
    %40 = vector.shape_cast %39 : vector<1x8xf32> to vector<1x1x8xf32>
    %41 = vector.broadcast %40 : vector<1x1x8xf32> to vector<4x8x8xf32>
    %42 = arith.mulf %37, %41 : vector<4x8x8xf32>
    %43 = arith.addf %33, %42 : vector<4x8x8xf32>
    %c0_i32_29 = arith.constant 0 : i32
    %44 = arith.addi %0, %c0_i32_29 : i32
    %c3_30 = arith.constant 3 : index
    %c0_31 = arith.constant 0 : index
    %45 = arith.index_cast %44 : i32 to index
    %c0_32 = arith.constant 0 : index
    %c0_33 = arith.constant 0 : index
    %46 = vector.load %arg2[%c3_30, %c0_31, %45, %c0_32, %c0_33] : memref<4x1x9x9x8xf32, #tpu.memory_space<vmem>>, vector<1x1x4x8x8xf32>
    %47 = vector.shape_cast %46 : vector<1x1x4x8x8xf32> to vector<4x8x8xf32>
    %c4 = arith.constant 4 : index
    %c0_34 = arith.constant 0 : index
    %c0_35 = arith.constant 0 : index
    %48 = vector.load %arg3[%c4, %c0_34, %c0_35] : memref<9x1x8xf32, #tpu.memory_space<vmem>>, vector<1x1x8xf32>
    %49 = vector.shape_cast %48 : vector<1x1x8xf32> to vector<1x8xf32>
    %50 = vector.shape_cast %49 : vector<1x8xf32> to vector<1x1x8xf32>
    %51 = vector.broadcast %50 : vector<1x1x8xf32> to vector<4x8x8xf32>
    %52 = arith.mulf %47, %51 : vector<4x8x8xf32>
    %53 = arith.addf %43, %52 : vector<4x8x8xf32>
    %c0_i32_36 = arith.constant 0 : i32
    %54 = arith.addi %0, %c0_i32_36 : i32
    %c2_37 = arith.constant 2 : index
    %c0_38 = arith.constant 0 : index
    %55 = arith.index_cast %54 : i32 to index
    %c1_39 = arith.constant 1 : index
    %c0_40 = arith.constant 0 : index
    %56 = vector.load %arg2[%c2_37, %c0_38, %55, %c1_39, %c0_40] : memref<4x1x9x9x8xf32, #tpu.memory_space<vmem>>, vector<1x1x4x8x8xf32>
    %57 = vector.shape_cast %56 : vector<1x1x4x8x8xf32> to vector<4x8x8xf32>
    %c5 = arith.constant 5 : index
    %c0_41 = arith.constant 0 : index
    %c0_42 = arith.constant 0 : index
    %58 = vector.load %arg3[%c5, %c0_41, %c0_42] : memref<9x1x8xf32, #tpu.memory_space<vmem>>, vector<1x1x8xf32>
    %59 = vector.shape_cast %58 : vector<1x1x8xf32> to vector<1x8xf32>
    %60 = vector.shape_cast %59 : vector<1x8xf32> to vector<1x1x8xf32>
    %61 = vector.broadcast %60 : vector<1x1x8xf32> to vector<4x8x8xf32>
    %62 = arith.mulf %57, %61 : vector<4x8x8xf32>
    %63 = arith.addf %53, %62 : vector<4x8x8xf32>
    %c1_i32 = arith.constant 1 : i32
    %64 = arith.addi %0, %c1_i32 : i32
    %c0_43 = arith.constant 0 : index
    %c0_44 = arith.constant 0 : index
    %65 = arith.index_cast %64 : i32 to index
    %c0_45 = arith.constant 0 : index
    %c0_46 = arith.constant 0 : index
    %66 = vector.load %arg2[%c0_43, %c0_44, %65, %c0_45, %c0_46] : memref<4x1x9x9x8xf32, #tpu.memory_space<vmem>>, vector<1x1x4x8x8xf32>
    %67 = vector.shape_cast %66 : vector<1x1x4x8x8xf32> to vector<4x8x8xf32>
    %c6 = arith.constant 6 : index
    %c0_47 = arith.constant 0 : index
    %c0_48 = arith.constant 0 : index
    %68 = vector.load %arg3[%c6, %c0_47, %c0_48] : memref<9x1x8xf32, #tpu.memory_space<vmem>>, vector<1x1x8xf32>
    %69 = vector.shape_cast %68 : vector<1x1x8xf32> to vector<1x8xf32>
    %70 = vector.shape_cast %69 : vector<1x8xf32> to vector<1x1x8xf32>
    %71 = vector.broadcast %70 : vector<1x1x8xf32> to vector<4x8x8xf32>
    %72 = arith.mulf %67, %71 : vector<4x8x8xf32>
    %73 = arith.addf %63, %72 : vector<4x8x8xf32>
    %c1_i32_49 = arith.constant 1 : i32
    %74 = arith.addi %0, %c1_i32_49 : i32
    %c1_50 = arith.constant 1 : index
    %c0_51 = arith.constant 0 : index
    %75 = arith.index_cast %74 : i32 to index
    %c0_52 = arith.constant 0 : index
    %c0_53 = arith.constant 0 : index
    %76 = vector.load %arg2[%c1_50, %c0_51, %75, %c0_52, %c0_53] : memref<4x1x9x9x8xf32, #tpu.memory_space<vmem>>, vector<1x1x4x8x8xf32>
    %77 = vector.shape_cast %76 : vector<1x1x4x8x8xf32> to vector<4x8x8xf32>
    %c7 = arith.constant 7 : index
    %c0_54 = arith.constant 0 : index
    %c0_55 = arith.constant 0 : index
    %78 = vector.load %arg3[%c7, %c0_54, %c0_55] : memref<9x1x8xf32, #tpu.memory_space<vmem>>, vector<1x1x8xf32>
    %79 = vector.shape_cast %78 : vector<1x1x8xf32> to vector<1x8xf32>
    %80 = vector.shape_cast %79 : vector<1x8xf32> to vector<1x1x8xf32>
    %81 = vector.broadcast %80 : vector<1x1x8xf32> to vector<4x8x8xf32>
    %82 = arith.mulf %77, %81 : vector<4x8x8xf32>
    %83 = arith.addf %73, %82 : vector<4x8x8xf32>
    %c1_i32_56 = arith.constant 1 : i32
    %84 = arith.addi %0, %c1_i32_56 : i32
    %c0_57 = arith.constant 0 : index
    %c0_58 = arith.constant 0 : index
    %85 = arith.index_cast %84 : i32 to index
    %c1_59 = arith.constant 1 : index
    %c0_60 = arith.constant 0 : index
    %86 = vector.load %arg2[%c0_57, %c0_58, %85, %c1_59, %c0_60] : memref<4x1x9x9x8xf32, #tpu.memory_space<vmem>>, vector<1x1x4x8x8xf32>
    %87 = vector.shape_cast %86 : vector<1x1x4x8x8xf32> to vector<4x8x8xf32>
    %c8 = arith.constant 8 : index
    %c0_61 = arith.constant 0 : index
    %c0_62 = arith.constant 0 : index
    %88 = vector.load %arg3[%c8, %c0_61, %c0_62] : memref<9x1x8xf32, #tpu.memory_space<vmem>>, vector<1x1x8xf32>
    %89 = vector.shape_cast %88 : vector<1x1x8xf32> to vector<1x8xf32>
    %90 = vector.shape_cast %89 : vector<1x8xf32> to vector<1x1x8xf32>
    %91 = vector.broadcast %90 : vector<1x1x8xf32> to vector<4x8x8xf32>
    %92 = arith.mulf %87, %91 : vector<4x8x8xf32>
    %93 = arith.addf %83, %92 : vector<4x8x8xf32>
    %94 = vector.extract_strided_slice %93 {offsets = [0, 0, 0], sizes = [4, 8, 1], strides = [1, 1, 1]} : vector<4x8x8xf32> to vector<4x8x1xf32>
    %c0_63 = arith.constant 0 : index
    %c0_64 = arith.constant 0 : index
    %95 = vector.load %arg5[%c0_63, %c0_64] : memref<8x16xf32, #tpu.memory_space<vmem>>, vector<1x16xf32>
    %96 = vector.shape_cast %95 : vector<1x16xf32> to vector<1x1x16xf32>
    %97 = vector.broadcast %94 : vector<4x8x1xf32> to vector<4x8x16xf32>
    %98 = vector.broadcast %96 : vector<1x1x16xf32> to vector<4x8x16xf32>
    %99 = arith.mulf %97, %98 : vector<4x8x16xf32>
    %c0_65 = arith.constant 0 : index
    %c0_66 = arith.constant 0 : index
    %100 = vector.load %arg6[%c0_65, %c0_66] : memref<1x16xf32, #tpu.memory_space<vmem>>, vector<1x16xf32>
    %101 = vector.shape_cast %100 : vector<1x16xf32> to vector<1x1x16xf32>
    %102 = vector.broadcast %101 : vector<1x1x16xf32> to vector<4x8x16xf32>
    %103 = arith.addf %99, %102 : vector<4x8x16xf32>
    %104 = vector.extract_strided_slice %93 {offsets = [0, 0, 1], sizes = [4, 8, 1], strides = [1, 1, 1]} : vector<4x8x8xf32> to vector<4x8x1xf32>
    %c1_67 = arith.constant 1 : index
    %c0_68 = arith.constant 0 : index
    %105 = vector.load %arg5[%c1_67, %c0_68] : memref<8x16xf32, #tpu.memory_space<vmem>>, vector<1x16xf32>
    %106 = vector.shape_cast %105 : vector<1x16xf32> to vector<1x1x16xf32>
    %107 = vector.broadcast %104 : vector<4x8x1xf32> to vector<4x8x16xf32>
    %108 = vector.broadcast %106 : vector<1x1x16xf32> to vector<4x8x16xf32>
    %109 = arith.mulf %107, %108 : vector<4x8x16xf32>
    %110 = arith.addf %103, %109 : vector<4x8x16xf32>
    %111 = vector.extract_strided_slice %93 {offsets = [0, 0, 2], sizes = [4, 8, 1], strides = [1, 1, 1]} : vector<4x8x8xf32> to vector<4x8x1xf32>
    %c2_69 = arith.constant 2 : index
    %c0_70 = arith.constant 0 : index
    %112 = vector.load %arg5[%c2_69, %c0_70] : memref<8x16xf32, #tpu.memory_space<vmem>>, vector<1x16xf32>
    %113 = vector.shape_cast %112 : vector<1x16xf32> to vector<1x1x16xf32>
    %114 = vector.broadcast %111 : vector<4x8x1xf32> to vector<4x8x16xf32>
    %115 = vector.broadcast %113 : vector<1x1x16xf32> to vector<4x8x16xf32>
    %116 = arith.mulf %114, %115 : vector<4x8x16xf32>
    %117 = arith.addf %110, %116 : vector<4x8x16xf32>
    %118 = vector.extract_strided_slice %93 {offsets = [0, 0, 3], sizes = [4, 8, 1], strides = [1, 1, 1]} : vector<4x8x8xf32> to vector<4x8x1xf32>
    %c3_71 = arith.constant 3 : index
    %c0_72 = arith.constant 0 : index
    %119 = vector.load %arg5[%c3_71, %c0_72] : memref<8x16xf32, #tpu.memory_space<vmem>>, vector<1x16xf32>
    %120 = vector.shape_cast %119 : vector<1x16xf32> to vector<1x1x16xf32>
    %121 = vector.broadcast %118 : vector<4x8x1xf32> to vector<4x8x16xf32>
    %122 = vector.broadcast %120 : vector<1x1x16xf32> to vector<4x8x16xf32>
    %123 = arith.mulf %121, %122 : vector<4x8x16xf32>
    %124 = arith.addf %117, %123 : vector<4x8x16xf32>
    %125 = vector.extract_strided_slice %93 {offsets = [0, 0, 4], sizes = [4, 8, 1], strides = [1, 1, 1]} : vector<4x8x8xf32> to vector<4x8x1xf32>
    %c4_73 = arith.constant 4 : index
    %c0_74 = arith.constant 0 : index
    %126 = vector.load %arg5[%c4_73, %c0_74] : memref<8x16xf32, #tpu.memory_space<vmem>>, vector<1x16xf32>
    %127 = vector.shape_cast %126 : vector<1x16xf32> to vector<1x1x16xf32>
    %128 = vector.broadcast %125 : vector<4x8x1xf32> to vector<4x8x16xf32>
    %129 = vector.broadcast %127 : vector<1x1x16xf32> to vector<4x8x16xf32>
    %130 = arith.mulf %128, %129 : vector<4x8x16xf32>
    %131 = arith.addf %124, %130 : vector<4x8x16xf32>
    %132 = vector.extract_strided_slice %93 {offsets = [0, 0, 5], sizes = [4, 8, 1], strides = [1, 1, 1]} : vector<4x8x8xf32> to vector<4x8x1xf32>
    %c5_75 = arith.constant 5 : index
    %c0_76 = arith.constant 0 : index
    %133 = vector.load %arg5[%c5_75, %c0_76] : memref<8x16xf32, #tpu.memory_space<vmem>>, vector<1x16xf32>
    %134 = vector.shape_cast %133 : vector<1x16xf32> to vector<1x1x16xf32>
    %135 = vector.broadcast %132 : vector<4x8x1xf32> to vector<4x8x16xf32>
    %136 = vector.broadcast %134 : vector<1x1x16xf32> to vector<4x8x16xf32>
    %137 = arith.mulf %135, %136 : vector<4x8x16xf32>
    %138 = arith.addf %131, %137 : vector<4x8x16xf32>
    %139 = vector.extract_strided_slice %93 {offsets = [0, 0, 6], sizes = [4, 8, 1], strides = [1, 1, 1]} : vector<4x8x8xf32> to vector<4x8x1xf32>
    %c6_77 = arith.constant 6 : index
    %c0_78 = arith.constant 0 : index
    %140 = vector.load %arg5[%c6_77, %c0_78] : memref<8x16xf32, #tpu.memory_space<vmem>>, vector<1x16xf32>
    %141 = vector.shape_cast %140 : vector<1x16xf32> to vector<1x1x16xf32>
    %142 = vector.broadcast %139 : vector<4x8x1xf32> to vector<4x8x16xf32>
    %143 = vector.broadcast %141 : vector<1x1x16xf32> to vector<4x8x16xf32>
    %144 = arith.mulf %142, %143 : vector<4x8x16xf32>
    %145 = arith.addf %138, %144 : vector<4x8x16xf32>
    %146 = vector.extract_strided_slice %93 {offsets = [0, 0, 7], sizes = [4, 8, 1], strides = [1, 1, 1]} : vector<4x8x8xf32> to vector<4x8x1xf32>
    %c7_79 = arith.constant 7 : index
    %c0_80 = arith.constant 0 : index
    %147 = vector.load %arg5[%c7_79, %c0_80] : memref<8x16xf32, #tpu.memory_space<vmem>>, vector<1x16xf32>
    %148 = vector.shape_cast %147 : vector<1x16xf32> to vector<1x1x16xf32>
    %149 = vector.broadcast %146 : vector<4x8x1xf32> to vector<4x8x16xf32>
    %150 = vector.broadcast %148 : vector<1x1x16xf32> to vector<4x8x16xf32>
    %151 = arith.mulf %149, %150 : vector<4x8x16xf32>
    %152 = arith.addf %145, %151 : vector<4x8x16xf32>
    %c0_i32_81 = arith.constant 0 : i32
    %153 = arith.addi %0, %c0_i32_81 : i32
    %c0_82 = arith.constant 0 : index
    %c0_83 = arith.constant 0 : index
    %154 = arith.index_cast %153 : i32 to index
    %c0_84 = arith.constant 0 : index
    %c0_85 = arith.constant 0 : index
    %155 = vector.load %arg2[%c0_82, %c0_83, %154, %c0_84, %c0_85] : memref<4x1x9x9x8xf32, #tpu.memory_space<vmem>>, vector<1x1x4x8x8xf32>
    %156 = vector.shape_cast %155 : vector<1x1x4x8x8xf32> to vector<4x8x8xf32>
    %c0_i32_86 = arith.constant 0 : i32
    %157 = arith.addi %0, %c0_i32_86 : i32
    %c1_87 = arith.constant 1 : index
    %c0_88 = arith.constant 0 : index
    %158 = arith.index_cast %157 : i32 to index
    %c0_89 = arith.constant 0 : index
    %c0_90 = arith.constant 0 : index
    %159 = vector.load %arg2[%c1_87, %c0_88, %158, %c0_89, %c0_90] : memref<4x1x9x9x8xf32, #tpu.memory_space<vmem>>, vector<1x1x4x8x8xf32>
    %160 = vector.shape_cast %159 : vector<1x1x4x8x8xf32> to vector<4x8x8xf32>
    %161 = arith.maximumf %156, %160 : vector<4x8x8xf32>
    %c0_i32_91 = arith.constant 0 : i32
    %162 = arith.addi %0, %c0_i32_91 : i32
    %c2_92 = arith.constant 2 : index
    %c0_93 = arith.constant 0 : index
    %163 = arith.index_cast %162 : i32 to index
    %c0_94 = arith.constant 0 : index
    %c0_95 = arith.constant 0 : index
    %164 = vector.load %arg2[%c2_92, %c0_93, %163, %c0_94, %c0_95] : memref<4x1x9x9x8xf32, #tpu.memory_space<vmem>>, vector<1x1x4x8x8xf32>
    %165 = vector.shape_cast %164 : vector<1x1x4x8x8xf32> to vector<4x8x8xf32>
    %166 = arith.maximumf %161, %165 : vector<4x8x8xf32>
    %c0_i32_96 = arith.constant 0 : i32
    %167 = arith.addi %0, %c0_i32_96 : i32
    %c3_97 = arith.constant 3 : index
    %c0_98 = arith.constant 0 : index
    %168 = arith.index_cast %167 : i32 to index
    %c0_99 = arith.constant 0 : index
    %c0_100 = arith.constant 0 : index
    %169 = vector.load %arg2[%c3_97, %c0_98, %168, %c0_99, %c0_100] : memref<4x1x9x9x8xf32, #tpu.memory_space<vmem>>, vector<1x1x4x8x8xf32>
    %170 = vector.shape_cast %169 : vector<1x1x4x8x8xf32> to vector<4x8x8xf32>
    %171 = arith.maximumf %166, %170 : vector<4x8x8xf32>
    %cst = arith.constant 0.000000e+00 : f32
    %172 = vector.broadcast %cst : f32 to vector<4x8x8xf32>
    %173 = tpu.concatenate %171, %172 in 2 : vector<4x8x8xf32>, vector<4x8x8xf32> -> vector<4x8x16xf32>
    %174 = arith.addf %152, %173 : vector<4x8x16xf32>
    %c0_101 = arith.constant 0 : index
    %c0_102 = arith.constant 0 : index
    %c0_103 = arith.constant 0 : index
    %c0_104 = arith.constant 0 : index
    %175 = vector.load %arg7[%c0_101, %c0_102, %c0_103, %c0_104] : memref<1x4x8x16xf32, #tpu.memory_space<vmem>>, vector<1x4x8x16xf32>
    %176 = vector.shape_cast %175 : vector<1x4x8x16xf32> to vector<4x8x16xf32>
    %177 = vector.shape_cast %174 : vector<4x8x16xf32> to vector<1x4x8x16xf32>
    tpu.vector_store %arg7[%c0_101, %c0_102, %c0_103, %c0_104], %177 {strides = array<i32>} : memref<1x4x8x16xf32, #tpu.memory_space<vmem>>, vector<1x4x8x16xf32>,
    return
  }
  func.func @transform_0(%arg0: i32, %arg1: i32) -> (i32, i32, i32, i32, i32) {
    %c0_i32 = arith.constant 0 : i32
    %c0_i32_0 = arith.constant 0 : i32
    %c0_i32_1 = arith.constant 0 : i32
    %c0_i32_2 = arith.constant 0 : i32
    %c0_i32_3 = arith.constant 0 : i32
    return %c0_i32, %arg0, %c0_i32_0, %c0_i32_1, %c0_i32_2 : i32, i32, i32, i32, i32
  }
  func.func @transform_1(%arg0: i32, %arg1: i32) -> (i32, i32, i32) {
    %c0_i32 = arith.constant 0 : i32
    %c0_i32_0 = arith.constant 0 : i32
    %c0_i32_1 = arith.constant 0 : i32
    %c0_i32_2 = arith.constant 0 : i32
    return %c0_i32, %c0_i32_0, %c0_i32_1 : i32, i32, i32
  }
  func.func @transform_2(%arg0: i32, %arg1: i32) -> (i32, i32) {
    %c0_i32 = arith.constant 0 : i32
    %c0_i32_0 = arith.constant 0 : i32
    %c0_i32_1 = arith.constant 0 : i32
    return %c0_i32, %c0_i32_0 : i32, i32
  }
  func.func @transform_3(%arg0: i32, %arg1: i32) -> (i32, i32) {
    %c0_i32 = arith.constant 0 : i32
    %c0_i32_0 = arith.constant 0 : i32
    %c0_i32_1 = arith.constant 0 : i32
    return %c0_i32, %c0_i32_0 : i32, i32
  }
  func.func @transform_4(%arg0: i32, %arg1: i32) -> (i32, i32) {
    %c0_i32 = arith.constant 0 : i32
    %c0_i32_0 = arith.constant 0 : i32
    %c0_i32_1 = arith.constant 0 : i32
    return %c0_i32, %c0_i32_0 : i32, i32
  }
  func.func @transform_5(%arg0: i32, %arg1: i32) -> (i32, i32, i32, i32) {
    %c0_i32 = arith.constant 0 : i32
    %c0_i32_0 = arith.constant 0 : i32
    %c0_i32_1 = arith.constant 0 : i32
    return %arg0, %arg1, %c0_i32, %c0_i32_0 : i32, i32, i32, i32
  }
}

</mosaic_0001>

<bundles_post_ra>
// kernel: tpu_custom_call.1
= control target key start
LH: loop header
LB: loop body
LE: loop exit
PB: predicated region body
PF: predicated region fallthrough
CT: control target
= control target key end

     0   :  { %s2078_s0 = inlined_call_operand.vmem [shape: f32[4,2,9,9,8], index: 0, kind: input, shape index: {}]   ;;  %s2079_s1 = inlined_call_operand.vmem [shape: f32[9,1,8], index: 1, kind: input, shape index: {}]   ;;  %s2080_s2 = inlined_call_operand.vmem [shape: f32[1,8], index: 2, kind: input, shape index: {}]   ;;  %s2081_s3 = inlined_call_operand.vmem [shape: f32[8,16], index: 3, kind: input, shape index: {}]   ;;  %s2082_s4 = inlined_call_operand.vmem [shape: f32[1,16], index: 4, kind: input, shape index: {}]   ;;  %s2083_s5 = inlined_call_operand.hbm [shape: f32[2,8,8,16], index: 5, kind: output, shape index: {}]  }
   0x1   :  { %2085 = sst [smem:[#allocation7_spill]] %s2078_s0 }
   0x2   :  { %10 = vsyncpa [#allocation4], 0 }
   0x3   :  { %12 = vsyncpa [#allocation4 + $0x1], 0  ;;  %s1491_s18 = smov 0   ;;  %s1493_s19 = smov 0  }
   0x4   :  { %s1495_s20 = smov 0   ;;  %s1497_s21 = smov 0  }
   0x5   :  { %s1499_s22 = smov 0   ;;  %s1501_s23 = smov 0  }
   0x6   :  { %s1503_s24 = smov 0   ;;  %s1505_s25 = smov 0  }
   0x7   :  { %s1507_s26 = smov 0   ;;  %s1509_s27 = smov 0  }
   0x8 LB: > { %s1144_s28 = sadd.s32 4294967295, %s1448_s27   ;;  %s1145_s29 = sadd.s32 4294967294, %s1448_s27   ;;  %s1448_s27 = sphi %s1509_s27, %s18_s27   ;;  %s1444_s26 = sphi %s1507_s26, %s2100_s26   ;;  %s1440_s25 = sphi %s1505_s25, %s2099_s25   ;;  %s1436_s24 = sphi %s1503_s24, %s2098_s24   ;;  %s1432_s23 = sphi %s1501_s23, %s2097_s23   ;;  %s1428_s22 = sphi %s1499_s22, %s2096_s22   ;;  %s1424_s21 = sphi %s1497_s21, %s2095_s21   ;;  %s1420_s20 = sphi %s1495_s20, %s2094_s20   ;;  %s1416_s19 = sphi %s1493_s19, %s2093_s19   ;;  %s1412_s18 = sphi %s1491_s18, %s2092_s18  }
   0x9   : > { %s27_s30 = sadd.s32 1, %s1440_s25  ;;  %s30_s6 = sadd.s32 1, %s1444_s26 }
   0xa   : > { %p28_p0 = scmp.ge.s32.totalorder %s27_s30, 2  ;;  %s37_s7 = sadd.s32 1, %s1428_s22 }
   0xb   : > { %p44_p1 = scmp.ne.s32.totalorder %s1428_s22, %s1424_s21  ;;  %p45_p2 = scmp.eq.s32.totalorder %s1448_s27, 0 }
   0xc   : > { %s2102_s30 = smov (%p28_p0, %s27_s30), 0  ;;  %s2104_s6 = smov (!%p28_p0, %s30_s6), %s1444_s26 }
   0xd   : > { %p1552_p3 = por %p45_p2, %p44_p1  ;;  %s145_s9 = ssub.s32 %s1440_s25, %s2102_s30 }
   0xe   : > { %p32_p4 = scmp.ge.s32.totalorder %s2104_s6, 2  ;;  %s149_s10 = sadd.s32 1, %s1420_s20 }
   0xf   : > { %p159_p5 = scmp.ne.s32.totalorder %s1420_s20, %s1416_s19  ;;  %p160_p6 = scmp.eq.s32.totalorder %s1144_s28, 3 }
  0x10   : > { %s2106_s6 = smov (%p32_p4, %s2104_s6), 0  ;;  %p165_p8 = scmp.ne.s32.totalorder %s1416_s19, %s1412_s18 }
  0x11   : > { %2087 = sst [smem:[#allocation6_spill]] %s2106_s6  ;;  %p1563_p7 = por %p160_p6, %p159_p5 }
  0x12   : > { %s34_s12 = ssub.s32 %s1444_s26, %s2106_s6  ;;  %p166_p9 = scmp.eq.s32.totalorder %s1145_s29, 3 }
  0x13   : > { %p35_p10 = scmp.eq.s32.totalorder %s34_s12, 0  ;;  %s146_s13 = sor.u32 %s145_s9, %s34_s12 }
  0x14   : > { %p147_p11 = scmp.eq.s32.totalorder %s146_s13, 0  ;;  %p1571_p12 = por %p166_p9, %p165_p8 }
  0x15   : > { %s1576_s15 = scalar_select %p35_p10, %s1428_s22, %s37_s7  }
  0x16   : > { %s1579_s16 = scalar_select %p147_p11, %s1420_s20, %s149_s10  }
  0x17   : > { %p1147_p13 = scmp.ge.s32.totalorder %s1448_s27, 4 }
  0x19   : > { %194 = sbr.rel (%p1147_p13) target bundleno = 75 (0x4b), region = 32 }
  0x1e   : > { %197 = sbr.rel (!%p1552_p3) target bundleno = 75 (0x4b), region = 36  ;;  %s199_s17 = sand.u32 (%p1552_p3), 1, %s1428_s22  }
  0x1f   : > { %s1225_s28 = smul.u32 (%p1552_p3), 144, %s1444_s26  ;;  %s2090_s0 = sld [smem:[#allocation7_spill]] (%p1552_p3) }
  0x20   : > { %s1224_s29 = smul.u32 (%p1552_p3), 576, %s199_s17 }
  0x22   : > { %s1594_s7 = scalar_lea.vmem (%p1552_p3), [#allocation2], %s1224_s29 }
  0x25   : > { %s1589_s13 = scalar_lea.vmem %s2090_s0, %s1225_s28 }
  0x26   : > { %v375_v0 = vld [vmem:[%s1589_s13] sm:$0xff]  ;;  %v377_v1 = vld [vmem:[%s1589_s13 + $0x8] sm:$0xff]  ;;  %v379_v2 = vld [vmem:[%s1589_s13 + $0x10] sm:$0xff] }
  0x27   : > { %376 = vst [vmem:[%s1594_s7] sm:$0xff] %v375_v0  ;;  %378 = vst [vmem:[%s1594_s7 + $0x8] sm:$0xff] %v377_v1  ;;  %v381_v3 = vld [vmem:[%s1589_s13 + $0x18] sm:$0xff]  ;;  %v383_v4 = vld [vmem:[%s1589_s13 + $0x20] sm:$0xff] }
  0x28   : > { %380 = vst [vmem:[%s1594_s7 + $0x10] sm:$0xff] %v379_v2  ;;  %v385_v5 = vld [vmem:[%s1589_s13 + $0x28] sm:$0xff]  ;;  %382 = vst [vmem:[%s1594_s7 + $0x18] sm:$0xff] %v381_v3  ;;  %v387_v6 = vld [vmem:[%s1589_s13 + $0x30] sm:$0xff] }
  0x29   : > { %384 = vst [vmem:[%s1594_s7 + $0x20] sm:$0xff] %v383_v4  ;;  %386 = vst [vmem:[%s1594_s7 + $0x28] sm:$0xff] %v385_v5  ;;  %v389_v7 = vld [vmem:[%s1589_s13 + $0x38] sm:$0xff]  ;;  %v391_v8 = vld [vmem:[%s1589_s13 + $0x40] sm:$0xff] }
  0x2a   : > { %388 = vst [vmem:[%s1594_s7 + $0x30] sm:$0xff] %v387_v6  ;;  %390 = vst [vmem:[%s1594_s7 + $0x38] sm:$0xff] %v389_v7  ;;  %v393_v9 = vld [vmem:[%s1589_s13 + $0x48] sm:$0xff]  ;;  %v395_v10 = vld [vmem:[%s1589_s13 + $0x50] sm:$0xff] }
  0x2b   : > { %392 = vst [vmem:[%s1594_s7 + $0x40] sm:$0xff] %v391_v8  ;;  %v397_v11 = vld [vmem:[%s1589_s13 + $0x58] sm:$0xff]  ;;  %394 = vst [vmem:[%s1594_s7 + $0x48] sm:$0xff] %v393_v9  ;;  %v399_v12 = vld [vmem:[%s1589_s13 + $0x60] sm:$0xff] }
  0x2c   : > { %396 = vst [vmem:[%s1594_s7 + $0x50] sm:$0xff] %v395_v10  ;;  %398 = vst [vmem:[%s1594_s7 + $0x58] sm:$0xff] %v397_v11  ;;  %v401_v13 = vld [vmem:[%s1589_s13 + $0x68] sm:$0xff]  ;;  %v403_v14 = vld [vmem:[%s1589_s13 + $0x70] sm:$0xff] }
  0x2d   : > { %400 = vst [vmem:[%s1594_s7 + $0x60] sm:$0xff] %v399_v12  ;;  %402 = vst [vmem:[%s1594_s7 + $0x68] sm:$0xff] %v401_v13  ;;  %v405_v15 = vld [vmem:[%s1589_s13 + $0x78] sm:$0xff]  ;;  %v407_v16 = vld [vmem:[%s1589_s13 + $0x80] sm:$0xff] }
  0x2e   : > { %404 = vst [vmem:[%s1594_s7 + $0x70] sm:$0xff] %v403_v14  ;;  %v409_v17 = vld [vmem:[%s1589_s13 + $0x88] sm:$0xff]  ;;  %406 = vst [vmem:[%s1594_s7 + $0x78] sm:$0xff] %v405_v15  ;;  %v411_v18 = vld [vmem:[%s1589_s13 + $0x120] sm:$0xff] }
  0x2f   : > { %408 = vst [vmem:[%s1594_s7 + $0x80] sm:$0xff] %v407_v16  ;;  %410 = vst [vmem:[%s1594_s7 + $0x88] sm:$0xff] %v409_v17  ;;  %v413_v19 = vld [vmem:[%s1589_s13 + $0x128] sm:$0xff]  ;;  %v415_v20 = vld [vmem:[%s1589_s13 + $0x130] sm:$0xff] }
  0x30   : > { %412 = vst [vmem:[%s1594_s7 + $0x90] sm:$0xff] %v411_v18  ;;  %414 = vst [vmem:[%s1594_s7 + $0x98] sm:$0xff] %v413_v19  ;;  %v417_v21 = vld [vmem:[%s1589_s13 + $0x138] sm:$0xff]  ;;  %v419_v22 = vld [vmem:[%s1589_s13 + $0x140] sm:$0xff] }
  0x31   : > { %416 = vst [vmem:[%s1594_s7 + $0xa0] sm:$0xff] %v415_v20  ;;  %v421_v23 = vld [vmem:[%s1589_s13 + $0x148] sm:$0xff]  ;;  %418 = vst [vmem:[%s1594_s7 + $0xa8] sm:$0xff] %v417_v21  ;;  %v423_v24 = vld [vmem:[%s1589_s13 + $0x150] sm:$0xff] }
  0x32   : > { %420 = vst [vmem:[%s1594_s7 + $0xb0] sm:$0xff] %v419_v22  ;;  %422 = vst [vmem:[%s1594_s7 + $0xb8] sm:$0xff] %v421_v23  ;;  %v425_v25 = vld [vmem:[%s1589_s13 + $0x158] sm:$0xff]  ;;  %v427_v26 = vld [vmem:[%s1589_s13 + $0x160] sm:$0xff] }
  0x33   : > { %424 = vst [vmem:[%s1594_s7 + $0xc0] sm:$0xff] %v423_v24  ;;  %426 = vst [vmem:[%s1594_s7 + $0xc8] sm:$0xff] %v425_v25  ;;  %v429_v27 = vld [vmem:[%s1589_s13 + $0x168] sm:$0xff]  ;;  %v431_v28 = vld [vmem:[%s1589_s13 + $0x170] sm:$0xff] }
  0x34   : > { %428 = vst [vmem:[%s1594_s7 + $0xd0] sm:$0xff] %v427_v26  ;;  %v433_v29 = vld [vmem:[%s1589_s13 + $0x178] sm:$0xff]  ;;  %430 = vst [vmem:[%s1594_s7 + $0xd8] sm:$0xff] %v429_v27  ;;  %v435_v30 = vld [vmem:[%s1589_s13 + $0x180] sm:$0xff] }
  0x35   : > { %432 = vst [vmem:[%s1594_s7 + $0xe0] sm:$0xff] %v431_v28  ;;  %434 = vst [vmem:[%s1594_s7 + $0xe8] sm:$0xff] %v433_v29  ;;  %v437_v31 = vld [vmem:[%s1589_s13 + $0x188] sm:$0xff]  ;;  %v439_v32 = vld [vmem:[%s1589_s13 + $0x190] sm:$0xff] }
  0x36   : > { %436 = vst [vmem:[%s1594_s7 + $0xf0] sm:$0xff] %v435_v30  ;;  %438 = vst [vmem:[%s1594_s7 + $0xf8] sm:$0xff] %v437_v31  ;;  %v441_v33 = vld [vmem:[%s1589_s13 + $0x198] sm:$0xff]  ;;  %v443_v34 = vld [vmem:[%s1589_s13 + $0x1a0] sm:$0xff] }
  0x37   : > { %440 = vst [vmem:[%s1594_s7 + $0x100] sm:$0xff] %v439_v32  ;;  %v445_v35 = vld [vmem:[%s1589_s13 + $0x1a8] sm:$0xff]  ;;  %442 = vst [vmem:[%s1594_s7 + $0x108] sm:$0xff] %v441_v33  ;;  %v447_v36 = vld [vmem:[%s1589_s13 + $0x240] sm:$0xff] }
  0x38   : > { %444 = vst [vmem:[%s1594_s7 + $0x110] sm:$0xff] %v443_v34  ;;  %446 = vst [vmem:[%s1594_s7 + $0x118] sm:$0xff] %v445_v35  ;;  %v449_v37 = vld [vmem:[%s1589_s13 + $0x248] sm:$0xff]  ;;  %v451_v38 = vld [vmem:[%s1589_s13 + $0x250] sm:$0xff] }
  0x39   : > { %448 = vst [vmem:[%s1594_s7 + $0x120] sm:$0xff] %v447_v36  ;;  %450 = vst [vmem:[%s1594_s7 + $0x128] sm:$0xff] %v449_v37  ;;  %v453_v39 = vld [vmem:[%s1589_s13 + $0x258] sm:$0xff]  ;;  %v455_v40 = vld [vmem:[%s1589_s13 + $0x260] sm:$0xff] }
  0x3a   : > { %452 = vst [vmem:[%s1594_s7 + $0x130] sm:$0xff] %v451_v38  ;;  %v457_v41 = vld [vmem:[%s1589_s13 + $0x268] sm:$0xff]  ;;  %454 = vst [vmem:[%s1594_s7 + $0x138] sm:$0xff] %v453_v39  ;;  %v459_v42 = vld [vmem:[%s1589_s13 + $0x270] sm:$0xff] }
  0x3b   : > { %456 = vst [vmem:[%s1594_s7 + $0x140] sm:$0xff] %v455_v40  ;;  %458 = vst [vmem:[%s1594_s7 + $0x148] sm:$0xff] %v457_v41  ;;  %v461_v43 = vld [vmem:[%s1589_s13 + $0x278] sm:$0xff]  ;;  %v463_v44 = vld [vmem:[%s1589_s13 + $0x280] sm:$0xff] }
  0x3c   : > { %460 = vst [vmem:[%s1594_s7 + $0x150] sm:$0xff] %v459_v42  ;;  %462 = vst [vmem:[%s1594_s7 + $0x158] sm:$0xff] %v461_v43  ;;  %v465_v45 = vld [vmem:[%s1589_s13 + $0x288] sm:$0xff]  ;;  %v467_v46 = vld [vmem:[%s1589_s13 + $0x290] sm:$0xff] }
  0x3d   : > { %464 = vst [vmem:[%s1594_s7 + $0x160] sm:$0xff] %v463_v44  ;;  %v469_v47 = vld [vmem:[%s1589_s13 + $0x298] sm:$0xff]  ;;  %466 = vst [vmem:[%s1594_s7 + $0x168] sm:$0xff] %v465_v45  ;;  %v471_v48 = vld [vmem:[%s1589_s13 + $0x2a0] sm:$0xff] }
  0x3e   : > { %468 = vst [vmem:[%s1594_s7 + $0x170] sm:$0xff] %v467_v46  ;;  %470 = vst [vmem:[%s1594_s7 + $0x178] sm:$0xff] %v469_v47  ;;  %v473_v49 = vld [vmem:[%s1589_s13 + $0x2a8] sm:$0xff]  ;;  %v475_v50 = vld [vmem:[%s1589_s13 + $0x2b0] sm:$0xff] }
  0x3f   : > { %472 = vst [vmem:[%s1594_s7 + $0x180] sm:$0xff] %v471_v48  ;;  %474 = vst [vmem:[%s1594_s7 + $0x188] sm:$0xff] %v473_v49  ;;  %v477_v51 = vld [vmem:[%s1589_s13 + $0x2b8] sm:$0xff]  ;;  %v479_v52 = vld [vmem:[%s1589_s13 + $0x2c0] sm:$0xff] }
  0x40   : > { %476 = vst [vmem:[%s1594_s7 + $0x190] sm:$0xff] %v475_v50  ;;  %v481_v53 = vld [vmem:[%s1589_s13 + $0x2c8] sm:$0xff]  ;;  %478 = vst [vmem:[%s1594_s7 + $0x198] sm:$0xff] %v477_v51  ;;  %v483_v54 = vld [vmem:[%s1589_s13 + $0x360] sm:$0xff] }
  0x41   : > { %480 = vst [vmem:[%s1594_s7 + $0x1a0] sm:$0xff] %v479_v52  ;;  %482 = vst [vmem:[%s1594_s7 + $0x1a8] sm:$0xff] %v481_v53  ;;  %v485_v55 = vld [vmem:[%s1589_s13 + $0x368] sm:$0xff]  ;;  %v487_v56 = vld [vmem:[%s1589_s13 + $0x370] sm:$0xff] }
  0x42   : > { %484 = vst [vmem:[%s1594_s7 + $0x1b0] sm:$0xff] %v483_v54  ;;  %486 = vst [vmem:[%s1594_s7 + $0x1b8] sm:$0xff] %v485_v55  ;;  %v489_v57 = vld [vmem:[%s1589_s13 + $0x378] sm:$0xff]  ;;  %v491_v58 = vld [vmem:[%s1589_s13 + $0x380] sm:$0xff] }
  0x43   : > { %488 = vst [vmem:[%s1594_s7 + $0x1c0] sm:$0xff] %v487_v56  ;;  %v493_v59 = vld [vmem:[%s1589_s13 + $0x388] sm:$0xff]  ;;  %490 = vst [vmem:[%s1594_s7 + $0x1c8] sm:$0xff] %v489_v57  ;;  %v495_v60 = vld [vmem:[%s1589_s13 + $0x390] sm:$0xff] }
  0x44   : > { %492 = vst [vmem:[%s1594_s7 + $0x1d0] sm:$0xff] %v491_v58  ;;  %494 = vst [vmem:[%s1594_s7 + $0x1d8] sm:$0xff] %v493_v59  ;;  %v497_v61 = vld [vmem:[%s1589_s13 + $0x398] sm:$0xff]  ;;  %v499_v62 = vld [vmem:[%s1589_s13 + $0x3a0] sm:$0xff] }
  0x45   : > { %496 = vst [vmem:[%s1594_s7 + $0x1e0] sm:$0xff] %v495_v60  ;;  %498 = vst [vmem:[%s1594_s7 + $0x1e8] sm:$0xff] %v497_v61  ;;  %v501_v63 = vld [vmem:[%s1589_s13 + $0x3a8] sm:$0xff]  ;;  %v503_v0 = vld [vmem:[%s1589_s13 + $0x3b0] sm:$0xff] }
  0x46   : > { %500 = vst [vmem:[%s1594_s7 + $0x1f0] sm:$0xff] %v499_v62  ;;  %v505_v1 = vld [vmem:[%s1589_s13 + $0x3b8] sm:$0xff]  ;;  %502 = vst [vmem:[%s1594_s7 + $0x1f8] sm:$0xff] %v501_v63  ;;  %v507_v2 = vld [vmem:[%s1589_s13 + $0x3c0] sm:$0xff] }
  0x47   : > { %504 = vst [vmem:[%s1594_s7 + $0x200] sm:$0xff] %v503_v0  ;;  %506 = vst [vmem:[%s1594_s7 + $0x208] sm:$0xff] %v505_v1  ;;  %v509_v3 = vld [vmem:[%s1589_s13 + $0x3c8] sm:$0xff]  ;;  %v511_v4 = vld [vmem:[%s1589_s13 + $0x3d0] sm:$0xff] }
  0x48   : > { %508 = vst [vmem:[%s1594_s7 + $0x210] sm:$0xff] %v507_v2  ;;  %510 = vst [vmem:[%s1594_s7 + $0x218] sm:$0xff] %v509_v3  ;;  %v513_v5 = vld [vmem:[%s1589_s13 + $0x3d8] sm:$0xff]  ;;  %v515_v6 = vld [vmem:[%s1589_s13 + $0x3e0] sm:$0xff] }
  0x49   : > { %512 = vst [vmem:[%s1594_s7 + $0x220] sm:$0xff] %v511_v4  ;;  %v517_v7 = vld [vmem:[%s1589_s13 + $0x3e8] sm:$0xff]  ;;  %514 = vst [vmem:[%s1594_s7 + $0x228] sm:$0xff] %v513_v5 }
  0x4a   : > { %516 = vst [vmem:[%s1594_s7 + $0x230] sm:$0xff] %v515_v6  ;;  %518 = vst [vmem:[%s1594_s7 + $0x238] sm:$0xff] %v517_v7 }
  0x4b PF: > { %p1149_p0 = scmp.ge.s32.totalorder %s1448_s27, 1  ;;  %p523_p1 = scmp.lt.s32.totalorder %s1448_s27, 5 }
  0x4d   : > { %p524_p2 = pnand %p1149_p0, %p523_p1 }
  0x4e   : > { %s530_s8 = sand.u32 (!%p524_p2), 1, %s1424_s21   ;;  %s1221_s17 = sshll.u32 (!%p524_p2), %s1432_s23, 6 }
  0x4f   : > { %527 = sbr.rel (%p524_p2) target bundleno = 330 (0x14a), region = 74  ;;  %s554_s9 = sand.u32 (!%p524_p2), 1, %s1416_s19  }
  0x50   : > { %s1226_s10 = smul.u32 (!%p524_p2), 576, %s530_s8  ;;  %s1150_s12 = sshll.u32 (!%p524_p2), %s554_s9, 5 }
  0x51   : > { %s1216_s21 = sshll.u32 (!%p524_p2), %s1432_s23, 2  ;;  %s1217_s8 = sshll.u32 (!%p524_p2), %s1436_s24, 3 }
  0x52   : > { %s532_s13 = scalar_lea.vmem (!%p524_p2), [#allocation2], %s1226_s10  ;;  %s1040_s0 = sadd.s32 (!%p524_p2), %s1217_s8, %s1216_s21 }
  0x53   : > { %s1747_s7 = scalar_lea.vmem (!%p524_p2), %s532_s13, %s1221_s17 [#allocation2]  ;;  %s1985_s13 = scalar_lea.vmem (!%p524_p2), [#allocation3], %s1150_s12 }
  0x54   : > { %v1450_v8 = vmov 0   ;;  %v1153_v9 = vld [vmem:[%s2079_s1] ss:$0 sm:$0xff]  ;;  %v1161_v10 = vld [vmem:[%s2079_s1 + $0x1] ss:$0 sm:$0xff]  ;;  %v1763_v14 = vld [vmem:[%s1747_s7 + $0xb0] sm:$0xff] }
  0x55   : > { %1325 = vset.pattern.permute.xlu1 %v1450_v8  ;;  %1324 = vset.pattern.permute.xlu0 %v1450_v8  ;;  %v1752_v11 = vld [vmem:[%s2080_s2] ss:$0 sm:$0xff]  ;;  %v1757_v12 = vld [vmem:[%s2079_s1 + $0x2] ss:$0 sm:$0xff]  ;;  %v603_v17 = vmul.f32 %v1161_v10, %v1763_v14  ;;  %v1773_v18 = vld [vmem:[%s2079_s1 + $0x3] ss:$0 sm:$0xff] }
  0x56   : > { %v1760_v13 = vld [vmem:[%s1747_s7 + $0x20] sm:$0xff]  ;;  %v1784_v21 = vld [vmem:[%s1747_s7 + $0x1d0] sm:$0xff]  ;;  %v1205_v6 = vld [vmem:[%s2079_s1 + $0x8] ss:$0 sm:$0xff]  ;;  %vm1013_vm0 = vcmask 64512   ;;  %vm1022_vm1 = vcmask 130048  }
  0x57   : > { %v1766_v15 = vld [vmem:[%s1747_s7 + $0x21] sm:$0xff]  ;;  %v574_v16 = vmul.f32 %v1153_v9, %v1760_v13  ;;  %v1787_v22 = vld [vmem:[%s1747_s7 + $0x30] sm:$0xff]  ;;  %s1218_s23 = sshll.u32 %s1040_s0, 7  ;;  %s1043_s24 = sshll.u32 %s1985_s13, 4  ;;  %s2015_s24 = int_to_ptr.vmem [resolvable:$true] %s1043_s24 }
  0x58   : > { %v1778_v19 = vld [vmem:[%s2079_s1 + $0x4] ss:$0 sm:$0xff]  ;;  %v623_v24 = vmul.f32 %v1757_v12, %v1766_v15  ;;  %v1796_v26 = vld [vmem:[%s1747_s7 + $0x90] sm:$0xff]  ;;  %v575_v32 = vmul.f32 %v1787_v22, %v1153_v9  ;;  %v1817_v38 = vld [vmem:[%s2079_s1 + $0x5] ss:$0 sm:$0xff]  ;;  %s2013_s10 = scalar_lea.hbm %s2083_s5, %s1218_s23  ;;  %s2021_s17 = scalar_lea.sflag [#allocation4], %s554_s9 }
  0x59   : > { %v1781_v20 = vld [vmem:[%s1747_s7 + $0x140] sm:$0xff]  ;;  %v585_v23 = vadd.f32 %v1752_v11, %v574_v16  ;;  %v1202_v29 = vld [vmem:[%s1747_s7 + $0x31] sm:$0xff]  ;;  %v601_v31 = vmul.f32 %v1161_v10, %v1796_v26  ;;  %v667_v36 = vmul.f32 %v1778_v19, %v1784_v21  ;;  %s1340_s28 = scalar_lea.vmem %s2015_s24, 512  ;;  %s1458_s29 = smov [#allocation3]  }
  0x5a   : > { %v1793_v25 = vld [vmem:[%s1747_s7] sm:$0xff]  ;;  %v645_v34 = vmul.f32 %v1773_v18, %v1781_v20  ;;  %v1822_v41 = vld [vmem:[%s1747_s7 + $0x150] sm:$0xff]  ;;  %v586_v46 = vadd.f32 %v1752_v11, %v575_v32  ;;  %v624_v48 = vmul.f32 %v1202_v29, %v1757_v12  ;;  %p1341_p3 = scmp.ne.s32.totalorder %s2015_s24, %s1340_s28  ;;  %s1344_s12 = sshll.u32 %s1458_s29, 4  ;;  %s1345_s12 = int_to_ptr.vmem [resolvable:$false] %s1344_s12 }
  0x5b   : > { %v609_v27 = vld [vmem:[%s1747_s7 + $0x1] sm:$0xff]  ;;  %v572_v30 = vmul.f32 %v1153_v9, %v1793_v25  ;;  %v607_v33 = vadd.f32 %v603_v17, %v585_v23  ;;  %v1825_v43 = vld [vmem:[%s1747_s7 + $0x1b0] sm:$0xff]  ;;  %v646_v58 = vmul.f32 %v1773_v18, %v1822_v41  ;;  %s1346_s21 = scalar_lea.vmem %s1345_s12, 1024  ;;  %p1347_p6 = scmp.lt.s32.totalorder %s2015_s24, %s1345_s12 }
  0x5c   : > { %v1800_v28 = vld [vmem:[%s1747_s7 + $0xc0] sm:$0xff]  ;;  %v621_v40 = vmul.f32 %v1757_v12, %v609_v27  ;;  %v1828_v44 = vld [vmem:[%s1747_s7 + $0x10] sm:$0xff]  ;;  %v665_v61 = vmul.f32 %v1778_v19, %v1825_v43  ;;  %p1342_p4 = pnand %p1341_p3, %p1563_p7  ;;  %p1348_p8 = scmp.lt.s32.totalorder %s1346_s21, %s1340_s28 }
  0x5d   : > { %v1809_v35 = vld [vmem:[%s1747_s7 + $0x120] sm:$0xff]  ;;  %v583_v39 = vadd.f32 %v1752_v11, %v572_v30  ;;  %v627_v42 = vadd.f32 %v623_v24, %v607_v33  ;;  %v604_v47 = vmul.f32 %v1800_v28, %v1161_v10  ;;  %v1200_v56 = vld [vmem:[%s1747_s7 + $0x11] sm:$0xff]  ;;  %v573_v63 = vmul.f32 %v1828_v44, %v1153_v9 }
  0x5e   : > { %v1180_v37 = vld [vmem:[%s1747_s7 + $0x141] sm:$0xff]  ;;  %v643_v51 = vmul.f32 %v1773_v18, %v1809_v35  ;;  %v1181_v62 = vld [vmem:[%s1747_s7 + $0x151] sm:$0xff]  ;;  %v622_v16 = vmul.f32 %v1200_v56, %v1757_v12  ;;  %p1343_p5 = pneg %p1342_p4  ;;  %p1349_p9 = por %p1348_p8, %p1347_p6 }
  0x5f   : > { %v1831_v45 = vld [vmem:[%s1747_s7 + $0xa0] sm:$0xff]  ;;  %v605_v50 = vadd.f32 %v601_v31, %v583_v39  ;;  %v649_v53 = vadd.f32 %v645_v34, %v627_v42  ;;  %v687_v54 = vmul.f32 %v1817_v38, %v1180_v37  ;;  %v608_v57 = vadd.f32 %v604_v47, %v586_v46  ;;  %v1861_v5 = vld [vmem:[%s1747_s7 + $0x130] sm:$0xff] }
  0x60   : > { %v1191_v49 = vld [vmem:[%s2079_s1 + $0x6] ss:$0 sm:$0xff]  ;;  %v1199_v59 = vld [vmem:[%s2079_s1 + $0x7] ss:$0 sm:$0xff]  ;;  %v602_v0 = vmul.f32 %v1831_v45, %v1161_v10  ;;  %v584_v10 = vadd.f32 %v1752_v11, %v573_v63  ;;  %v688_v27 = vmul.f32 %v1817_v38, %v1181_v62  ;;  %v1197_v33 = vld [vmem:[%s1747_s7 + $0xd0] sm:$0xff]  ;;  %v644_v11 = vmul.f32 %v1773_v18, %v1861_v5  ;;  %p1350_p10 = pnand %p1349_p9, %p1343_p5 }
  0x61   : > { %v1842_v52 = vld [vmem:[%s1747_s7 + $0x1e0] sm:$0xff]  ;;  %v625_v60 = vadd.f32 %v621_v40, %v605_v50  ;;  %v671_v1 = vadd.f32 %v667_v36, %v649_v53  ;;  %v710_v2 = vmul.f32 %v1191_v49, %v1787_v22  ;;  %v628_v3 = vadd.f32 %v624_v48, %v608_v57  ;;  %v1179_v40 = vld [vmem:[%s1747_s7 + $0x131] sm:$0xff] }
  0x62   : > { %v1178_v55 = vld [vmem:[%s1747_s7 + $0x121] sm:$0xff]  ;;  %v668_v4 = vmul.f32 %v1778_v19, %v1842_v52  ;;  %v732_v23 = vmul.f32 %v1199_v59, %v1800_v28  ;;  %v708_v32 = vmul.f32 %v1191_v49, %v1828_v44  ;;  %v606_v34 = vadd.f32 %v602_v0, %v584_v10 }
  0x63   : > { %v647_v7 = vadd.f32 %v643_v51, %v625_v60  ;;  %v685_v8 = vmul.f32 %v1817_v38, %v1178_v55  ;;  %v1189_v9 = vld [vmem:[%s1747_s7 + $0x40] sm:$0xff]  ;;  %v691_v17 = vadd.f32 %v687_v54, %v671_v1  ;;  %v650_v24 = vadd.f32 %v646_v58, %v628_v3 }
  0x64   : > { %v1873_v30 = vld [vmem:[%s1747_s7 + $0x1c0] sm:$0xff]  ;;  %v752_v37 = vmul.f32 %v1205_v6, %v1202_v29  ;;  %v711_v39 = vmul.f32 %v1191_v49, %v1189_v9  ;;  %v730_v46 = vmul.f32 %v1199_v59, %v1831_v45  ;;  %v626_v48 = vadd.f32 %v622_v16, %v606_v34 }
  0x65   : > { %v669_v31 = vadd.f32 %v665_v61, %v647_v7  ;;  %v714_v36 = vadd.f32 %v710_v2, %v691_v17  ;;  %v672_v12 = vadd.f32 %v668_v4, %v650_v24  ;;  %v1203_v47 = vld [vmem:[%s1747_s7 + $0x41] sm:$0xff]  ;;  %v666_v50 = vmul.f32 %v1778_v19, %v1873_v30 }
  0x66   : > { %v733_v54 = vmul.f32 %v1199_v59, %v1197_v33  ;;  %v750_v57 = vmul.f32 %v1205_v6, %v1200_v56  ;;  %v648_v58 = vadd.f32 %v644_v11, %v626_v48  ;;  %v686_v18 = vmul.f32 %v1817_v38, %v1179_v40  ;;  %v1206_v48 = vld [vmem:[%s2081_s3] ss:$0 sm:$0xff] }
  0x67   : > { %v689_v42 = vadd.f32 %v685_v8, %v669_v31  ;;  %v736_v51 = vadd.f32 %v732_v23, %v714_v36  ;;  %v692_v53 = vadd.f32 %v688_v27, %v672_v12  ;;  %v753_v61 = vmul.f32 %v1205_v6, %v1203_v47 }
  0x68   : > { %v670_v63 = vadd.f32 %v666_v50, %v648_v58  ;;  %v709_v0 = vmul.f32 %v1191_v49, %v1760_v13  ;;  %v731_v3 = vmul.f32 %v1199_v59, %v1763_v14  ;;  %v751_v38 = vmul.f32 %v1205_v6, %v1766_v15 }
  0x69   : > { %v712_v55 = vadd.f32 %v708_v32, %v689_v42  ;;  %v1885_v29 = vadd.f32 %v752_v37, %v736_v51  ;;  %v715_v60 = vadd.f32 %v711_v39, %v692_v53  ;;  %v1451_v9 = vmov 1  }
  0x6a   : > { %v690_v2 = vadd.f32 %v686_v18, %v670_v63  ;;  %v1452_v49 = vmov 2   ;;  %v1453_v15 = vmov 3   ;;  %v1454_v59 = vmov 4  }
  0x6b   : > { %v734_v62 = vadd.f32 %v730_v46, %v712_v55  ;;  %771 = vperm.xlu1 %1325, %v1885_v29   ;;  %v737_v1 = vadd.f32 %v733_v54, %v715_v60  ;;  %v1455_v6 = vmov 5   ;;  %v1456_v10 = vmov 6   ;;  %v1914_v54 = vld [vmem:[%s2082_s4] ss:$0 sm:$0xff]  ;;  %v1208_v55 = vld [vmem:[%s2081_s3 + $0x1] ss:$0 sm:$0xff] }
  0x6c   : > { %v713_v56 = vadd.f32 %v709_v0, %v690_v2  ;;  %v1457_v16 = vmov 7  }
  0x6d   : > { %v754_v19 = vadd.f32 %v750_v57, %v734_v62  ;;  %v757_v4 = vadd.f32 %v753_v61, %v737_v1  ;;  %v1926_v61 = vld [vmem:[%s2081_s3 + $0x3] ss:$0 sm:$0xff] }
  0x6e   : > { %v735_v7 = vadd.f32 %v731_v3, %v713_v56  ;;  %v1001_v3 = vmax.f32 %v1793_v25, %v1796_v26  ;;  %v1934_v56 = vld [vmem:[%s2081_s3 + $0x4] ss:$0 sm:$0xff] }
  0x6f   : > { %761 = vperm.xlu0 %1324, %v754_v19   ;;  %776 = vperm.xlu1 %1325, %v757_v4  }
  0x70   : > { %v755_v8 = vadd.f32 %v751_v38, %v735_v7 }
  0x73   : > { %1327 = vset.pattern.permute.xlu1 %v1451_v9  ;;  %766 = vperm.xlu0 %1324, %v755_v8  }
  0x74   : > { %804 = vperm.xlu1 %1327, %v755_v8  }
  0x77   : > { %1326 = vset.pattern.permute.xlu0 %v1451_v9  ;;  %v1940_v9 = vld [vmem:[%s2081_s3 + $0x5] ss:$0 sm:$0xff] }
  0x78   : > { %808 = vperm.xlu1 %1327, %v1885_v29   ;;  %800 = vperm.xlu0 %1326, %v754_v19  }
  0x7c   : > { %1328 = vset.pattern.permute.xlu1 %v1452_v49  ;;  %812 = vperm.xlu0 %1326, %v757_v4  }
  0x7d   : > { %829 = vperm.xlu1 %1328, %v754_v19  }
  0x80   : > { %1329 = vset.pattern.permute.xlu0 %v1452_v49 }
  0x81   : > { %837 = vperm.xlu1 %1328, %v1885_v29   ;;  %833 = vperm.xlu0 %1329, %v755_v8  }
  0x85   : > { %841 = vperm.xlu1 %1328, %v757_v4   ;;  %1330 = vset.pattern.permute.xlu0 %v1453_v15 }
  0x86   : > { %858 = vperm.xlu0 %1330, %v754_v19  }
  0x89   : > { %1331 = vset.pattern.permute.xlu1 %v1453_v15 }
  0x8a   : > { %862 = vperm.xlu1 %1331, %v755_v8   ;;  %870 = vperm.xlu0 %1330, %v757_v4  }
  0x8e   : > { %866 = vperm.xlu1 %1331, %v1885_v29   ;;  %1333 = vset.pattern.permute.xlu0 %v1454_v59 }
  0x8f   : > { %891 = vperm.xlu0 %1333, %v755_v8  }
  0x92   : > { %1332 = vset.pattern.permute.xlu1 %v1454_v59 }
  0x93   : > { %887 = vperm.xlu1 %1332, %v754_v19   ;;  %1334 = vset.pattern.permute.xlu0 %v1455_v6 }
  0x94   : > { %916 = vperm.xlu0 %1334, %v754_v19  }
  0x97   : > { %895 = vperm.xlu1 %1332, %v1885_v29  }
  0x98   : > { %928 = vperm.xlu0 %1334, %v757_v4  }
  0x9b   : > { %899 = vperm.xlu1 %1332, %v757_v4  }
  0x9c   : > { %1337 = vset.pattern.permute.xlu0 %v1456_v10 }
  0x9d   : > { %949 = vperm.xlu0 %1337, %v755_v8  }
  0x9f   : > { %1335 = vset.pattern.permute.xlu1 %v1455_v6  ;;  %v1005_v6 = vmax.f32 %v1001_v3, %v1809_v35  ;;  %v1002_v3 = vmax.f32 %v1828_v44, %v1831_v45 }
  0xa0   : > { %920 = vperm.xlu1 %1335, %v755_v8  }
  0xa1   : > { %1338 = vset.pattern.permute.xlu0 %v1457_v16  ;;  %v1009_v35 = vmax.f32 %v1005_v6, %v1825_v43 }
  0xa2   : > { %974 = vperm.xlu0 %1338, %v754_v19  }
  0xa4   : > { %924 = vperm.xlu1 %1335, %v1885_v29  }
  0xa6   : > { %986 = vperm.xlu0 %1338, %v757_v4  }
  0xa8   : > { %1336 = vset.pattern.permute.xlu1 %v1456_v10 }
  0xa9   : > { %945 = vperm.xlu1 %1336, %v754_v19  }
  0xad   : > { %953 = vperm.xlu1 %1336, %v1885_v29  }
  0xb1   : > { %957 = vperm.xlu1 %1336, %v757_v4  }
  0xb5   : > { %1339 = vset.pattern.permute.xlu1 %v1457_v16 }
  0xb6   : > { %978 = vperm.xlu1 %1339, %v755_v8  }
  0xba   : > { %982 = vperm.xlu1 %1339, %v1885_v29   ;;  %v1209_v29 = vld [vmem:[%s2081_s3 + $0x2] ss:$0 sm:$0xff] }
  0xe6   : > { %v1898_v17 = vpop.permute.xlu1 %771 }
  0xea   : > { %v762_v23 = vpop.permute.xlu0 %761  ;;  %v777_v24 = vpop.permute.xlu1 %776 }
  0xeb   : > { %v783_v51 = vmul.f32 %v1206_v48, %v762_v23  ;;  %v786_v1 = vmul.f32 %v1206_v48, %v777_v24 }
  0xed   : > { %v794_v58 = vadd.f32 %v1914_v54, %v783_v51  ;;  %v797_v15 = vadd.f32 %v1914_v54, %v786_v1  ;;  %v1213_v51 = vld [vmem:[%s2081_s3 + $0x6] ss:$0 sm:$0xff] }
  0xee   : > { %v767_v27 = vpop.permute.xlu0 %766 }
  0xef   : > { %v805_v31 = vpop.permute.xlu1 %804  ;;  %v784_v4 = vmul.f32 %v1206_v48, %v767_v27 }
  0xf0   : > { %v820_v16 = vmul.f32 %v1208_v55, %v805_v31 }
  0xf1   : > { %v795_v10 = vadd.f32 %v1914_v54, %v784_v4 }
  0xf3   : > { %v1900_v32 = vpop.permute.xlu1 %808  ;;  %v801_v33 = vpop.permute.xlu0 %800 }
  0xf4   : > { %v819_v18 = vmul.f32 %v1208_v55, %v801_v33 }
  0xf6   : > { %v823_v63 = vadd.f32 %v819_v18, %v794_v58 }
  0xf7   : > { %v813_v34 = vpop.permute.xlu0 %812 }
  0xf8   : > { %v830_v11 = vpop.permute.xlu1 %829  ;;  %v822_v38 = vmul.f32 %v1208_v55, %v813_v34  ;;  %v1953_v34 = vld [vmem:[%s2081_s3 + $0x7] ss:$0 sm:$0xff] }
  0xf9   : > { %v848_v0 = vmul.f32 %v1209_v29, %v830_v11 }
  0xfa   : > { %v826_v23 = vadd.f32 %v822_v38, %v797_v15 }
  0xfb   : > { %v852_v7 = vadd.f32 %v848_v0, %v823_v63  ;;  %v785_v63 = vmul.f32 %v1206_v48, %v1898_v17 }
  0xfc   : > { %v1902_v36 = vpop.permute.xlu1 %837  ;;  %v834_v37 = vpop.permute.xlu0 %833 }
  0xfd   : > { %v849_v33 = vmul.f32 %v1209_v29, %v834_v37  ;;  %v850_v15 = vmul.f32 %v1209_v29, %v1902_v36 }
 0x100   : > { %v842_v12 = vpop.permute.xlu1 %841 }
 0x101   : > { %v859_v39 = vpop.permute.xlu0 %858  ;;  %v851_v26 = vmul.f32 %v1209_v29, %v842_v12 }
 0x102   : > { %v877_v19 = vmul.f32 %v1926_v61, %v859_v39 }
 0x103   : > { %v855_v12 = vadd.f32 %v851_v26, %v826_v23 }
 0x104   : > { %v881_v25 = vadd.f32 %v877_v19, %v852_v7  ;;  %v1014_v19 = vsel %vm1013_vm0, %v1009_v35, 0.0 }
 0x105   : > { %v863_v40 = vpop.permute.xlu1 %862  ;;  %v871_v46 = vpop.permute.xlu0 %870 }
 0x106   : > { %v880_v39 = vmul.f32 %v1926_v61, %v871_v46  ;;  %v878_v31 = vmul.f32 %v1926_v61, %v863_v40 }
 0x108   : > { %v884_v40 = vadd.f32 %v880_v39, %v855_v12 }
 0x109   : > { %v1904_v42 = vpop.permute.xlu1 %866 }
 0x10a   : > { %v892_v50 = vpop.permute.xlu0 %891 }
 0x10e   : > { %v888_v47 = vpop.permute.xlu1 %887 }
 0x10f   : > { %v917_v57 = vpop.permute.xlu0 %916  ;;  %v906_v8 = vmul.f32 %v1934_v56, %v888_v47  ;;  %v824_v47 = vadd.f32 %v820_v16, %v795_v10 }
 0x110   : > { %v935_v27 = vmul.f32 %v1940_v9, %v917_v57  ;;  %v1004_v57 = vmax.f32 %v1787_v22, %v1800_v28  ;;  %v821_v22 = vmul.f32 %v1208_v55, %v1900_v32  ;;  %v1006_v32 = vmax.f32 %v1002_v3, %v1861_v5 }
 0x111   : > { %v910_v24 = vadd.f32 %v906_v8, %v881_v25  ;;  %v853_v0 = vadd.f32 %v849_v33, %v824_v47  ;;  %v796_v8 = vadd.f32 %v1914_v54, %v785_v63 }
 0x112   : > { %v1909_v53 = vpop.permute.xlu1 %895  ;;  %v1008_v38 = vmax.f32 %v1004_v57, %v1822_v41 }
 0x113   : > { %v929_v62 = vpop.permute.xlu0 %928  ;;  %v939_v58 = vadd.f32 %v935_v27, %v910_v24  ;;  %v882_v28 = vadd.f32 %v878_v31, %v853_v0  ;;  %v825_v55 = vadd.f32 %v821_v22, %v796_v8 }
 0x114   : > { %v938_v17 = vmul.f32 %v1940_v9, %v929_v62  ;;  %v879_v62 = vmul.f32 %v1926_v61, %v1904_v42  ;;  %v1012_v54 = vmax.f32 %v1008_v38, %v1842_v52  ;;  %v1010_v52 = vmax.f32 %v1006_v32, %v1873_v30 }
 0x116   : > { %v900_v60 = vpop.permute.xlu1 %899  ;;  %v1017_v23 = vsel %vm1013_vm0, %v1012_v54, 0.0 }
 0x117   : > { %v909_v18 = vmul.f32 %v1934_v56, %v900_v60  ;;  %v907_v60 = vmul.f32 %v1934_v56, %v892_v50  ;;  %v1003_v50 = vmax.f32 %v1760_v13, %v1763_v14  ;;  %v854_v13 = vadd.f32 %v850_v15, %v825_v55 }
 0x118   : > { %v1942_v49 = vpop.permute.xlu0 %949  ;;  %v908_v14 = vmul.f32 %v1934_v56, %v1909_v53 }
 0x119   : > { %v913_v7 = vadd.f32 %v909_v18, %v884_v40  ;;  %v911_v41 = vadd.f32 %v907_v60, %v882_v28  ;;  %v965_v42 = vmul.f32 %v1213_v51, %v1942_v49  ;;  %v1007_v6 = vmax.f32 %v1003_v50, %v1781_v20 }
 0x11a   : > { %v883_v10 = vadd.f32 %v879_v62, %v854_v13  ;;  %v1015_v20 = vsel %vm1013_vm0, %v1010_v52, 0.0 }
 0x11b   : > { %v921_v2 = vpop.permute.xlu1 %920  ;;  %v942_v36 = vadd.f32 %v938_v17, %v913_v7 }
 0x11c   : > { %v936_v25 = vmul.f32 %v1940_v9, %v921_v2  ;;  %v912_v53 = vadd.f32 %v908_v14, %v883_v10 }
 0x11d   : > { %v975_v11 = vpop.permute.xlu0 %974 }
 0x11e   : > { %v993_v43 = vmul.f32 %v1953_v34, %v975_v11  ;;  %v940_v2 = vadd.f32 %v936_v25, %v911_v41  ;;  %v1011_v11 = vmax.f32 %v1007_v6, %v1784_v21 }
 0x11f   : > { %v1945_v59 = vpop.permute.xlu1 %924 }
 0x120   : > { %v937_v16 = vmul.f32 %v1940_v9, %v1945_v59  ;;  %v969_v56 = vadd.f32 %v965_v42, %v940_v2  ;;  %v1016_v31 = vsel %vm1013_vm0, %v1011_v11, 0.0 }
 0x121   : > { %v987_v44 = vpop.permute.xlu0 %986 }
 0x122   : > { %v996_v29 = vmul.f32 %v1953_v34, %v987_v44  ;;  %v941_v9 = vadd.f32 %v937_v16, %v912_v53 }
 0x124   : > { %v946_v37 = vpop.permute.xlu1 %945 }
 0x125   : > { %v964_v46 = vmul.f32 %v1213_v51, %v946_v37 }
 0x127   : > { %v968_v1 = vadd.f32 %v964_v46, %v939_v58 }
 0x128   : > { %v954_v4 = vpop.permute.xlu1 %953 }
 0x129   : > { %v997_v48 = vadd.f32 %v993_v43, %v968_v1  ;;  %v966_v49 = vmul.f32 %v1213_v51, %v954_v4 }
 0x12b   : > { %v1018_v45 = vadd.f32 %v1014_v19, %v997_v48  ;;  %v970_v39 = vadd.f32 %v966_v49, %v941_v9 }
 0x12c   : > { %v958_v26 = vpop.permute.xlu1 %957 }
 0x12d   : > { %1023 = vst.msk [vmem:[%s1985_s13] sm:$0xff] %vm1022_vm1, %v1018_v45  ;;  %v967_v5 = vmul.f32 %v1213_v51, %v958_v26 }
 0x12f   : > { %v971_v61 = vadd.f32 %v967_v5, %v942_v36 }
 0x131   : > { %v1000_v24 = vadd.f32 %v996_v29, %v971_v61  ;;  %v979_v27 = vpop.permute.xlu1 %978 }
 0x132   : > { %v994_v30 = vmul.f32 %v1953_v34, %v979_v27 }
 0x133   : > { %v1021_v33 = vadd.f32 %v1017_v23, %v1000_v24 }
 0x134   : > { %v998_v59 = vadd.f32 %v994_v30, %v969_v56 }
 0x135   : > { %1026 = vst.msk [vmem:[%s1985_s13 + $0x18] sm:$0xff] %vm1022_vm1, %v1021_v33  ;;  %v983_v12 = vpop.permute.xlu1 %982 }
 0x136   : > { %v1019_v35 = vadd.f32 %v1015_v20, %v998_v59  ;;  %v995_v47 = vmul.f32 %v1953_v34, %v983_v12 }
 0x138   : > { %1024 = vst.msk [vmem:[%s1985_s13 + $0x8] sm:$0xff] %vm1022_vm1, %v1019_v35  ;;  %v999_v21 = vadd.f32 %v995_v47, %v970_v39 }
 0x13a   : > { %v1020_v51 = vadd.f32 %v1016_v31, %v999_v21 }
 0x13c   : > { %1025 = vst.msk [vmem:[%s1985_s13 + $0x10] sm:$0xff] %vm1022_vm1, %v1020_v51 }
 0x13d   : > { %1353 = shalt.err (!%p1350_p10)
}
 0x13e   : > { %s1354_s9 = scalar_lea.hbm %s2013_s10, 512  ;;  %s1358_s0 = scalar_lea.hbm %s2083_s5, 2048 }
 0x13f   : > { %p1355_p11 = scmp.ne.s32.totalorder %s2013_s10, %s1354_s9  ;;  %p1359_p1 = scmp.lt.s32.totalorder %s2013_s10, %s2083_s5 }
 0x140   : > { %p1360_p2 = scmp.lt.s32.totalorder %s1358_s0, %s1354_s9 }
 0x141   : > { %p1356_p13 = pnand %p1355_p11, %p1563_p7 }
 0x142   : > { %p1361_p3 = por %p1360_p2, %p1359_p1 }
 0x143   : > { %p1357_p0 = pneg %p1356_p13 }
 0x145   : > { %p1362_p4 = pnand %p1361_p3, %p1357_p0 }
 0x147   : > { %1365 = shalt.err (!%p1362_p4)
}
 0x148   : > { %s1459_s6 = smov 128   ;;  %s1460_s28 = smov 8  }
 0x149   : > { %1227 = dma.vmem_to_hbm [thread:$0]  (%p1563_p7), %s2015_s24, 512, %s2013_s10, %s2021_s17, %s1459_s6, %s1459_s6, %s1460_s28  }
 0x14a PF: > { %p1233_p5 = scmp.ge.s32.totalorder %s1448_s27, 2  ;;  %s1058_s29 = sand.u32 1, %s1412_s18  }
 0x14b   : > { %s1059_s12 = scalar_lea.sflag [#allocation4], %s1058_s29 }
 0x14c   : > { %p1230_p6 = pnand %p1233_p5, %p1571_p12 }
 0x14e   : > { %p1231_p8 = pneg %p1230_p6 }
 0x150   : > { %1407 = dma.done.wait (%p1231_p8), %s1059_s12, 512  }
 0x151   : > { %1409 = vsyncadd (%p1231_p8), %s1059_s12, 4294966784  ;;  %s18_s27 = sadd.s32 1, %s1448_s27   ;;  %s2091_s11 = sld [smem:[#allocation6_spill]] }
 0x152   : > { %p15_p9 = scmp.ge.s32.totalorder %s18_s27, 6   ;;  %s2092_s18 = smov %s1416_s19 }
 0x153   : > { %s2093_s19 = smov %s1420_s20  ;;  %s2094_s20 = smov %s1579_s16 }
 0x154   : > { %s2095_s21 = smov %s1428_s22  ;;  %s2096_s22 = smov %s1576_s15 }
 0x155   : > { %s2097_s23 = smov %s1440_s25  ;;  %s2098_s24 = smov %s1444_s26 }
 0x156   : > { %s2099_s25 = smov %s2102_s30  ;;  %17 = sbr.rel (!%p15_p9) target bundleno = 8 (0x8), region = 132 }
 0x157   : > { %s2100_s26 = smov %s2091_s11 }
 0x15b   :  { %1064 = vsyncpa [#allocation4], 1 }
 0x15c   :  { %1066 = vsyncpa [#allocation4 + $0x1], 1 }

</bundles_post_ra>
